<compile_context>
chip_gen: v6e
topology: v6e:2x2x1
jax: 0.10.0
libtpu: 0.0.40
codegen_flags: <defaults>
</compile_context>

<pallas_src>
import functools

import jax
import jax.numpy as jnp
from jax import lax
from jax.experimental import pallas as pl
from jax.experimental.pallas import tpu as pltpu


_TARGET_STEP_BYTES = 2 * 1024 * 1024  # aim for ~2 MiB of logits moved per grid step


def _kld_kernel(logits_ref, weight_ref, sum_out_ref, cnt_out_ref,
                sum_acc, cnt_acc, *, num_classes, hw, tile, bn):
    s = pl.program_id(1)

    @pl.when(s == 0)
    def _init():
        sum_acc[...] = jnp.zeros_like(sum_acc)
        cnt_acc[...] = jnp.zeros_like(cnt_acc)

    lo = logits_ref[...].astype(jnp.float32)   # (bn, C, tile)   spatial on lanes
    w = weight_ref[...].astype(jnp.float32)    # (bn, 1, tile)

    # Per pixel:  sum_c log_softmax(lo)_c = sum_c(lo) - C * logsumexp(lo)
    #   kld summed over C = -(1/C) * w * (sum_c(lo) - C*lse) = w * (lse - mean_c(lo))
    m = jnp.max(lo, axis=1, keepdims=True)                               # (bn,1,tile)
    lse = m + jnp.log(jnp.sum(jnp.exp(lo - m), axis=1, keepdims=True))   # (bn,1,tile)
    mean_logit = jnp.sum(lo, axis=1, keepdims=True) * (1.0 / num_classes)

    contrib = w * (lse - mean_logit)                                     # (bn,1,tile)
    pos = (w > 0.0).astype(jnp.float32)                                  # (bn,1,tile)

    if hw % tile != 0:  # static: only emit masking when the spatial tail is ragged
        col = s * tile + lax.broadcasted_iota(jnp.int32, (bn, 1, tile), 2)
        valid = col < hw
        # NOTE: mask is applied to BOTH contrib and pos, after the exp/log, so
        # padded lanes never reach the accumulators (NaN in the discarded branch
        # of jnp.where does not propagate).
        contrib = jnp.where(valid, contrib, 0.0)
        pos = jnp.where(valid, pos, 0.0)

    sum_acc[...] += contrib
    cnt_acc[...] += pos

    @pl.when(s == pl.num_programs(1) - 1)
    def _finalize():
        # Lane-dense (1,1,128) partial output per batch block; the wrapper does
        # the final cross-block sum and the divide.
        total = jnp.sum(sum_acc[...])
        count = jnp.sum(cnt_acc[...])
        lane = lax.broadcasted_iota(jnp.int32, (1, 1, 128), 2)
        sum_out_ref[...] = jnp.where(lane == 0, total, 0.0)
        cnt_out_ref[...] = jnp.where(lane == 0, count, 0.0)


def _round_down_128(x):
    return (x // 128) * 128


def _largest_divisor_leq(n, cap):
    cap = max(1, min(int(cap), n))
    for d in range(cap, 0, -1):
        if n % d == 0:
            return d
    return 1


def _vmem_budget_bytes():
    # Conservative default corresponds to v7x's 64 MiB physical VMEM.
    cap = 64 * 1024 * 1024
    try:
        info = pltpu.get_tpu_info()
        cap = int(getattr(info, "vmem_capacity_bytes", cap)) or cap
    except Exception:
        pass
    # ~60% of physical: ~38 MiB on v7x, ~76 MiB on v5e/v6e (capped at 80 MiB).
    return min(int(cap * 0.6), 80 * 1024 * 1024)


def _pick_tiling(n, c, hw, itemsize, vmem_budget):
    """Pick (bn, tile): batch block and spatial (lane) tile."""
    # VMEM bytes per lane-column per batch row: double-buffered logits + weight
    # blocks plus two f32 accumulators.
    col_bytes = 2 * (c + 1) * itemsize + 2 * 4
    usable = int(vmem_budget * 0.75)  # headroom for outputs / internal scratch

    if hw <= 128:
        tile = hw  # full dim (allowed even if < 128)
    else:
        t = _round_down_128(_TARGET_STEP_BYTES // max(1, c * itemsize))
        cap = _round_down_128(usable // col_bytes)
        tile = max(128, min(t, cap, _round_down_128(hw)))

    # Grow the batch block when one whole spatial pass is cheaper than the
    # per-step target (amortizes the ~0.35 us step overhead for small images).
    step_bytes_per_row = max(1, c * tile * itemsize)
    bn_want = _TARGET_STEP_BYTES // step_bytes_per_row
    bn_cap = usable // max(1, tile * col_bytes)
    bn = _largest_divisor_leq(n, max(1, min(bn_want, bn_cap)))
    return bn, tile


def kld_loss(logits, weight):
    """logits: (N, C, H, W); weight: (N, 1, H, W). Returns scalar f32 loss."""
    n, c, h, w_dim = logits.shape
    assert weight.shape == (n, 1, h, w_dim), (logits.shape, weight.shape)
    hw = h * w_dim

    # Free views: keep NCHW layout, spatial on the last (lane) axis.
    lo = logits.reshape(n, c, hw)
    wt = weight.reshape(n, 1, hw)

    itemsize = jnp.dtype(logits.dtype).itemsize
    vmem_budget = _vmem_budget_bytes()
    bn, tile = _pick_tiling(n, c, hw, itemsize, vmem_budget)
    num_nb = n // bn
    num_s = pl.cdiv(hw, tile)

    kernel = functools.partial(_kld_kernel, num_classes=c, hw=hw, tile=tile, bn=bn)

    sums, cnts = pl.pallas_call(
        kernel,
        out_shape=(
            jax.ShapeDtypeStruct((num_nb, 1, 128), jnp.float32),
            jax.ShapeDtypeStruct((num_nb, 1, 128), jnp.float32),
        ),
        grid_spec=pltpu.PrefetchScalarGridSpec(
            num_scalar_prefetch=0,
            grid=(num_nb, num_s),
            in_specs=[
                pl.BlockSpec((bn, c, tile), lambda i, j: (i, 0, j)),
                pl.BlockSpec((bn, 1, tile), lambda i, j: (i, 0, j)),
            ],
            out_specs=[
                pl.BlockSpec((1, 1, 128), lambda i, j: (i, 0, 0)),
                pl.BlockSpec((1, 1, 128), lambda i, j: (i, 0, 0)),
            ],
            scratch_shapes=[
                pltpu.VMEM((bn, 1, tile), jnp.float32),  # running weighted-kld sums
                pltpu.VMEM((bn, 1, tile), jnp.float32),  # running (weight > 0) counts
            ],
        ),
        compiler_params=pltpu.CompilerParams(
            # No state shared across the batch axis -> it can shard across
            # TensorCores (v7x).  The spatial reduction axis stays sequential.
            dimension_semantics=("parallel", "arbitrary"),
            vmem_limit_bytes=vmem_budget,
        ),
    )(lo, wt)

    # Tiny final reduction + divide in the wrapper.
    # NOTE: if no weight element is > 0 this divides by zero (NaN/Inf), matching
    # the PyTorch module's behavior.
    return jnp.sum(sums) / jnp.sum(cnts)


def _reference(logits, weight):
    # Pure-JAX mirror of the PyTorch forward for verification.
    val_num = jnp.sum(weight > 0).astype(jnp.float32)
    ls = jax.nn.log_softmax(logits, axis=1)
    c = logits.shape[1]
    kld = (-1.0 / c) * weight * ls
    return jnp.sum(kld) / val_num


if __name__ == "__main__":
    key = jax.random.PRNGKey(0)

    cases = [
        (2, 4, 16, 16),    # spec shape: one step, bn=2
        (3, 5, 12, 11),    # ragged spatial tail (hw=132): masked lanes
        (2, 32, 96, 96),   # multiple batch blocks: parallel n axis, per-block finalize
    ]
    for idx, (n, c, h, w) in enumerate(cases):
        k1, k2, key = jax.random.split(key, 3)
        logits = jax.random.normal(k1, (n, c, h, w), dtype=jnp.float32)
        # weight is a non-negative per-pixel mask (some zeros), N x 1 x H x W.
        weight = (jax.random.uniform(k2, (n, 1, h, w)) > 0.3).astype(jnp.float32)

        loss = jax.block_until_ready(kld_loss(logits, weight))
        ref = _reference(logits, weight)
        assert jnp.allclose(loss, ref, rtol=1e-3, atol=1e-6), (idx, loss, ref)

    print("KERNEL_OK")
</pallas_src>

<mosaic_0001>
module attributes {stable_mosaic.version = 11 : i64} {
  func.func @_kld_kernel(%arg0: i32, %arg1: i32, %arg2: memref<2x4x256xf32, #tpu.memory_space<vmem>>, %arg3: memref<2x1x256xf32, #tpu.memory_space<vmem>>, %arg4: memref<1x1x128xf32, #tpu.memory_space<vmem>>, %arg5: memref<1x1x128xf32, #tpu.memory_space<vmem>>, %arg6: memref<2x1x256xf32, #tpu.memory_space<vmem>>, %arg7: memref<2x1x256xf32, #tpu.memory_space<vmem>>) attributes {dimension_semantics = [#tpu.dimension_semantics<parallel>, #tpu.dimension_semantics<arbitrary>], iteration_bounds = array<i64: 1, 1>, scalar_prefetch = 0 : i64, scratch_operands = 2 : i64, tpu.core_type = #tpu.core_type<tc>, window_params = [{transform_indices = @transform_0, window_bounds = array<i64: 2, 4, 256>}, {transform_indices = @transform_1, window_bounds = array<i64: 2, 1, 256>}, {transform_indices = @transform_2, window_bounds = array<i64: 1, 1, 128>}, {transform_indices = @transform_3, window_bounds = array<i64: 1, 1, 128>}]} {
    %c0_i32 = arith.constant 0 : i32
    %0 = arith.cmpi eq, %arg1, %c0_i32 : i32
    %1 = arith.extui %0 : i1 to i32
    %c0_i32_0 = arith.constant 0 : i32
    %2 = arith.cmpi ne, %1, %c0_i32_0 : i32
    scf.if %2 {
      %cst_24 = arith.constant 0.000000e+00 : f32
      %33 = vector.broadcast %cst_24 : f32 to vector<2x1x256xf32>
      %c0_25 = arith.constant 0 : index
      %c0_26 = arith.constant 0 : index
      %c0_27 = arith.constant 0 : index
      %34 = vector.load %arg6[%c0_25, %c0_26, %c0_27] : memref<2x1x256xf32, #tpu.memory_space<vmem>>, vector<2x1x256xf32>
      tpu.vector_store %arg6[%c0_25, %c0_26, %c0_27], %33 {strides = array<i32>} : memref<2x1x256xf32, #tpu.memory_space<vmem>>, vector<2x1x256xf32>,
      %cst_28 = arith.constant 0.000000e+00 : f32
      %35 = vector.broadcast %cst_28 : f32 to vector<2x1x256xf32>
      %c0_29 = arith.constant 0 : index
      %c0_30 = arith.constant 0 : index
      %c0_31 = arith.constant 0 : index
      %36 = vector.load %arg7[%c0_29, %c0_30, %c0_31] : memref<2x1x256xf32, #tpu.memory_space<vmem>>, vector<2x1x256xf32>
      tpu.vector_store %arg7[%c0_29, %c0_30, %c0_31], %35 {strides = array<i32>} : memref<2x1x256xf32, #tpu.memory_space<vmem>>, vector<2x1x256xf32>,
    } else {
    }
    %c0 = arith.constant 0 : index
    %c0_1 = arith.constant 0 : index
    %c0_2 = arith.constant 0 : index
    %3 = vector.load %arg2[%c0, %c0_1, %c0_2] : memref<2x4x256xf32, #tpu.memory_space<vmem>>, vector<2x4x256xf32>
    %c0_3 = arith.constant 0 : index
    %c0_4 = arith.constant 0 : index
    %c0_5 = arith.constant 0 : index
    %4 = vector.load %arg3[%c0_3, %c0_4, %c0_5] : memref<2x1x256xf32, #tpu.memory_space<vmem>>, vector<2x1x256xf32>
    %cst = arith.constant dense<0xFF800000> : vector<2x256xf32>
    %5 = vector.multi_reduction <maximumf>, %3, %cst [1] : vector<2x4x256xf32> to vector<2x256xf32>
    %6 = vector.shape_cast %5 : vector<2x256xf32> to vector<2x1x256xf32>
    %7 = vector.broadcast %6 : vector<2x1x256xf32> to vector<2x4x256xf32>
    %8 = arith.subf %3, %7 : vector<2x4x256xf32>
    %9 = math.exp %8 : vector<2x4x256xf32>
    %cst_6 = arith.constant dense<0.000000e+00> : vector<2x256xf32>
    %10 = vector.multi_reduction <add>, %9, %cst_6 [1] : vector<2x4x256xf32> to vector<2x256xf32>
    %11 = vector.shape_cast %10 : vector<2x256xf32> to vector<2x1x256xf32>
    %12 = math.log %11 : vector<2x1x256xf32>
    %13 = arith.addf %6, %12 : vector<2x1x256xf32>
    %cst_7 = arith.constant dense<0.000000e+00> : vector<2x256xf32>
    %14 = vector.multi_reduction <add>, %3, %cst_7 [1] : vector<2x4x256xf32> to vector<2x256xf32>
    %15 = vector.shape_cast %14 : vector<2x256xf32> to vector<2x1x256xf32>
    %cst_8 = arith.constant 2.500000e-01 : f32
    %16 = vector.broadcast %cst_8 : f32 to vector<2x1x256xf32>
    %17 = arith.mulf %15, %16 : vector<2x1x256xf32>
    %18 = arith.subf %13, %17 : vector<2x1x256xf32>
    %19 = arith.mulf %4, %18 : vector<2x1x256xf32>
    %cst_9 = arith.constant 0.000000e+00 : f32
    %20 = vector.broadcast %cst_9 : f32 to vector<2x1x256xf32>
    %21 = arith.cmpf ogt, %4, %20 : vector<2x1x256xf32>
    %22 = arith.extui %21 : vector<2x1x256xi1> to vector<2x1x256xi32>
    %23 = arith.sitofp %22 : vector<2x1x256xi32> to vector<2x1x256xf32>
    %c0_10 = arith.constant 0 : index
    %c0_11 = arith.constant 0 : index
    %c0_12 = arith.constant 0 : index
    %24 = vector.load %arg6[%c0_10, %c0_11, %c0_12] : memref<2x1x256xf32, #tpu.memory_space<vmem>>, vector<2x1x256xf32>
    %25 = arith.addf %24, %19 : vector<2x1x256xf32>
    %c0_13 = arith.constant 0 : index
    %c0_14 = arith.constant 0 : index
    %c0_15 = arith.constant 0 : index
    %26 = vector.load %arg6[%c0_13, %c0_14, %c0_15] : memref<2x1x256xf32, #tpu.memory_space<vmem>>, vector<2x1x256xf32>
    tpu.vector_store %arg6[%c0_13, %c0_14, %c0_15], %25 {strides = array<i32>} : memref<2x1x256xf32, #tpu.memory_space<vmem>>, vector<2x1x256xf32>,
    %c0_16 = arith.constant 0 : index
    %c0_17 = arith.constant 0 : index
    %c0_18 = arith.constant 0 : index
    %27 = vector.load %arg7[%c0_16, %c0_17, %c0_18] : memref<2x1x256xf32, #tpu.memory_space<vmem>>, vector<2x1x256xf32>
    %28 = arith.addf %27, %23 : vector<2x1x256xf32>
    %c0_19 = arith.constant 0 : index
    %c0_20 = arith.constant 0 : index
    %c0_21 = arith.constant 0 : index
    %29 = vector.load %arg7[%c0_19, %c0_20, %c0_21] : memref<2x1x256xf32, #tpu.memory_space<vmem>>, vector<2x1x256xf32>
    tpu.vector_store %arg7[%c0_19, %c0_20, %c0_21], %28 {strides = array<i32>} : memref<2x1x256xf32, #tpu.memory_space<vmem>>, vector<2x1x256xf32>,
    %c0_i32_22 = arith.constant 0 : i32
    %30 = arith.cmpi eq, %arg1, %c0_i32_22 : i32
    %31 = arith.extui %30 : i1 to i32
    %c0_i32_23 = arith.constant 0 : i32
    %32 = arith.cmpi ne, %31, %c0_i32_23 : i32
    scf.if %32 {
      %c0_24 = arith.constant 0 : index
      %c0_25 = arith.constant 0 : index
      %c0_26 = arith.constant 0 : index
      %33 = vector.load %arg6[%c0_24, %c0_25, %c0_26] : memref<2x1x256xf32, #tpu.memory_space<vmem>>, vector<2x1x256xf32>
      %34 = vector.shape_cast %33 : vector<2x1x256xf32> to vector<1x2x1x256xf32>
      %cst_27 = arith.constant dense<0.000000e+00> : vector<1xf32>
      %35 = vector.multi_reduction <add>, %34, %cst_27 [1, 2, 3] : vector<1x2x1x256xf32> to vector<1xf32>
      %36 = vector.shape_cast %35 : vector<1xf32> to vector<1x1x1x1xf32>
      %37 = vector.extract %36[0, 0, 0, 0] : f32 from vector<1x1x1x1xf32>
      %c0_28 = arith.constant 0 : index
      %c0_29 = arith.constant 0 : index
      %c0_30 = arith.constant 0 : index
      %38 = vector.load %arg7[%c0_28, %c0_29, %c0_30] : memref<2x1x256xf32, #tpu.memory_space<vmem>>, vector<2x1x256xf32>
      %39 = vector.shape_cast %38 : vector<2x1x256xf32> to vector<1x2x1x256xf32>
      %cst_31 = arith.constant dense<0.000000e+00> : vector<1xf32>
      %40 = vector.multi_reduction <add>, %39, %cst_31 [1, 2, 3] : vector<1x2x1x256xf32> to vector<1xf32>
      %41 = vector.shape_cast %40 : vector<1xf32> to vector<1x1x1x1xf32>
      %42 = vector.extract %41[0, 0, 0, 0] : f32 from vector<1x1x1x1xf32>
      %43 = tpu.iota {dimensions = array<i32: 2>} : vector<1x1x128xi32>
      %c0_i32_32 = arith.constant 0 : i32
      %44 = vector.broadcast %c0_i32_32 : i32 to vector<1x1x128xi32>
      %45 = arith.cmpi eq, %43, %44 : vector<1x1x128xi32>
      %cst_33 = arith.constant 0.000000e+00 : f32
      %46 = vector.broadcast %37 : f32 to vector<1x1x128xf32>
      %47 = vector.broadcast %cst_33 : f32 to vector<1x1x128xf32>
      %48 = arith.select %45, %46, %47 : vector<1x1x128xi1>, vector<1x1x128xf32>
      %c0_34 = arith.constant 0 : index
      %c0_35 = arith.constant 0 : index
      %c0_36 = arith.constant 0 : index
      %49 = vector.load %arg4[%c0_34, %c0_35, %c0_36] : memref<1x1x128xf32, #tpu.memory_space<vmem>>, vector<1x1x128xf32>
      tpu.vector_store %arg4[%c0_34, %c0_35, %c0_36], %48 {strides = array<i32>} : memref<1x1x128xf32, #tpu.memory_space<vmem>>, vector<1x1x128xf32>,
      %c0_i32_37 = arith.constant 0 : i32
      %50 = vector.broadcast %c0_i32_37 : i32 to vector<1x1x128xi32>
      %51 = arith.cmpi eq, %43, %50 : vector<1x1x128xi32>
      %cst_38 = arith.constant 0.000000e+00 : f32
      %52 = vector.broadcast %42 : f32 to vector<1x1x128xf32>
      %53 = vector.broadcast %cst_38 : f32 to vector<1x1x128xf32>
      %54 = arith.select %51, %52, %53 : vector<1x1x128xi1>, vector<1x1x128xf32>
      %c0_39 = arith.constant 0 : index
      %c0_40 = arith.constant 0 : index
      %c0_41 = arith.constant 0 : index
      %55 = vector.load %arg5[%c0_39, %c0_40, %c0_41] : memref<1x1x128xf32, #tpu.memory_space<vmem>>, vector<1x1x128xf32>
      tpu.vector_store %arg5[%c0_39, %c0_40, %c0_41], %54 {strides = array<i32>} : memref<1x1x128xf32, #tpu.memory_space<vmem>>, vector<1x1x128xf32>,
    } else {
    }
    return
  }
  func.func @transform_0(%arg0: i32, %arg1: i32) -> (i32, i32, i32) {
    %c0_i32 = arith.constant 0 : i32
    %c0_i32_0 = arith.constant 0 : i32
    return %arg0, %c0_i32, %arg1 : i32, i32, i32
  }
  func.func @transform_1(%arg0: i32, %arg1: i32) -> (i32, i32, i32) {
    %c0_i32 = arith.constant 0 : i32
    %c0_i32_0 = arith.constant 0 : i32
    return %arg0, %c0_i32, %arg1 : i32, i32, i32
  }
  func.func @transform_2(%arg0: i32, %arg1: i32) -> (i32, i32, i32) {
    %c0_i32 = arith.constant 0 : i32
    %c0_i32_0 = arith.constant 0 : i32
    %c0_i32_1 = arith.constant 0 : i32
    return %arg0, %c0_i32, %c0_i32_0 : i32, i32, i32
  }
  func.func @transform_3(%arg0: i32, %arg1: i32) -> (i32, i32, i32) {
    %c0_i32 = arith.constant 0 : i32
    %c0_i32_0 = arith.constant 0 : i32
    %c0_i32_1 = arith.constant 0 : i32
    return %arg0, %c0_i32, %c0_i32_0 : i32, i32, i32
  }
}

</mosaic_0001>

<bundles_post_ra>
// kernel: tpu_custom_call.1
= control target key start
LH: loop header
LB: loop body
LE: loop exit
PB: predicated region body
PF: predicated region fallthrough
CT: control target
= control target key end

     0   :  { %9 = vsyncpa [#allocation5], 0  ;;  %s606_s0 = inlined_call_operand.hbm [shape: f32[2,4,256], index: 0, kind: input, shape index: {}]   ;;  %s607_s1 = inlined_call_operand.hbm [shape: f32[2,1,256], index: 1, kind: input, shape index: {}]   ;;  %s608_s2 = inlined_call_operand.hbm [shape: f32[1,1,128], index: 2, kind: output, shape index: {0}]   ;;  %s609_s3 = inlined_call_operand.hbm [shape: f32[1,1,128], index: 3, kind: output, shape index: {1}]  }
   0x1   :  { %10 = vsyncpa [#allocation8], 0 }
   0x2   :  { %11 = vsyncpa [#allocation6], 0 }
   0x3   :  { %12 = vsyncpa [#allocation11], 0  ;;  %s491_s12 = smov [#allocation4]  }
   0x4   :  { %s18_s13 = sshll.u32 %s491_s12, 4  ;;  %s19_s13 = int_to_ptr.vmem [resolvable:$true] %s18_s13 }
   0x5   :  { %s411_s14 = scalar_lea.vmem %s19_s13, 256  ;;  %p416_p1 = scmp.lt.s32.totalorder %s19_s13, %s19_s13 }
   0x6   :  { %p412_p0 = scmp.ne.s32.totalorder %s19_s13, %s411_s14  ;;  %p417_p2 = scmp.lt.s32.totalorder %s411_s14, %s411_s14 }
   0x8   :  { %p418_p3 = por %p417_p2, %p416_p1 }
   0xa   :  { %p419_p4 = pnand %p418_p3, %p412_p0 }
   0xc   :  { %422 = shalt.err (!%p419_p4)
}
   0xd   :  { %s492_s15 = smov 128   ;;  %s493_s16 = smov 8  }
   0xe   :  { %24 = dma.hbm_to_vmem [thread:$0]  %s606_s0, 256, %s19_s13, [#allocation5], %s492_s15, %s492_s15, %s493_s16  }
   0xf   :  { %s494_s19 = smov [#allocation7]  }
  0x10   :  { %s30_s20 = sshll.u32 %s494_s19, 4  ;;  %s31_s20 = int_to_ptr.vmem [resolvable:$true] %s30_s20 }
  0x11   :  { %s431_s21 = scalar_lea.vmem %s31_s20, 64  ;;  %p436_p6 = scmp.lt.s32.totalorder %s31_s20, %s31_s20 }
  0x12   :  { %p432_p5 = scmp.ne.s32.totalorder %s31_s20, %s431_s21  ;;  %p437_p7 = scmp.lt.s32.totalorder %s431_s21, %s431_s21 }
  0x14   :  { %p438_p8 = por %p437_p7, %p436_p6 }
  0x16   :  { %p439_p9 = pnand %p438_p8, %p432_p5 }
  0x18   :  { %442 = shalt.err (!%p439_p9)
}
  0x19   :  { %s495_s22 = smov 32   ;;  %s496_s23 = smov 2  }
  0x1a   :  { %36 = dma.hbm_to_vmem [thread:$0]  %s607_s1, 64, %s31_s20, [#allocation8], %s495_s22, %s495_s22, %s496_s23  }
  0x1b   :  { %483 = dma.done.wait [#allocation5], 256  }
  0x1c   :  { %484 = vsyncadd [#allocation5], 4294967040 }
  0x1d   :  { %485 = dma.done.wait [#allocation8], 64  }
  0x1e   :  { %486 = vsyncadd [#allocation8], 4294967232  ;;  %v47_v0 = vlaneseq  ;;  %v497_v2 = vmov 0.0   ;;  %vm65_vm1 = vcmask 1043456   ;;  %v55_v3 = vld [vmem:[#allocation4] sm:$0xff]  ;;  %v56_v4 = vld [vmem:[#allocation4 + $0x8] sm:$0xff] }
  0x1f   :  { %v61_v5 = vcombine.high %v55_v3, %v55_v3  ;;  %v540_v6 = vcombine.high %v56_v4, %v56_v4  ;;  %v66_v7 = vsel %vm65_vm1, %v55_v3, -inf  ;;  %v80_v8 = vsel %vm65_vm1, %v56_v4, -inf  ;;  %v551_v33 = vld [vmem:[#allocation7] sm:$0x3]  ;;  %v553_v34 = vld [vmem:[#allocation7 + $0x2] sm:$0x3] }
  0x20   :  { %vm528_vm0 = vcmp.lt.s32.totalorder %v47_v0, 256  ;;  %v67_v9 = vrot.slane %v66_v7, 4  ;;  %v81_v10 = vrot.slane %v80_v8, 4  ;;  %vm228_vm2 = vcmp.gt.f32.partialorder %v551_v33, 0.0  ;;  %s499_s0 = smov [#allocation9]   ;;  %s500_s27 = smov [#allocation10]  }
  0x21   :  { %51 = vst.msk [vmem:[#allocation2] sm:$0x3] %vm528_vm0, %v497_v2  ;;  %52 = vst.msk [vmem:[#allocation2 + $0x2] sm:$0x3] %vm528_vm0, %v497_v2  ;;  %v73_v11 = vsel %vm65_vm1, %v61_v5, -inf  ;;  %v87_v12 = vsel %vm65_vm1, %v540_v6, -inf }
  0x22   :  { %53 = vst.msk [vmem:[#allocation3] sm:$0x3] %vm528_vm0, %v497_v2  ;;  %54 = vst.msk [vmem:[#allocation3 + $0x2] sm:$0x3] %vm528_vm0, %v497_v2  ;;  %v68_v13 = vmax.f32 %v66_v7, %v67_v9  ;;  %v74_v14 = vrot.slane %v73_v11, 4  ;;  %v82_v15 = vmax.f32 %v80_v8, %v81_v10  ;;  %v88_v16 = vrot.slane %v87_v12, 4 }
  0x23   :  { %vm229_vm3 = vcmp.gt.f32.partialorder %v553_v34, 0.0  ;;  %v373_v41 = vsel %vm228_vm2, 1.0, %v497_v2  ;;  %v154_v50 = vsel %vm65_vm1, %v55_v3, 0.0  ;;  %v168_v57 = vsel %vm65_vm1, %v56_v4, 0.0  ;;  %s349_s1 = sshll.u32 %s499_s0, 4  ;;  %s359_s28 = sshll.u32 %s500_s27, 4  ;;  %s350_s1 = int_to_ptr.vmem [resolvable:$true] %s349_s1  ;;  %s360_s28 = int_to_ptr.vmem [resolvable:$true] %s359_s28 }
  0x24   :  { %v69_v17 = vrot.slane %v68_v13, 2  ;;  %v75_v18 = vmax.f32 %v73_v11, %v74_v14  ;;  %v83_v19 = vrot.slane %v82_v15, 2  ;;  %v89_v20 = vmax.f32 %v87_v12, %v88_v16  ;;  %s443_s30 = scalar_lea.vmem %s350_s1, 16  ;;  %s447_s4 = scalar_lea.vmem %s350_s1, 32 }
  0x25   :  { %v374_v42 = vsel %vm229_vm3, 1.0, %v497_v2  ;;  %v155_v60 = vrot.slane %v154_v50, 4  ;;  %v161_v61 = vsel %vm65_vm1, %v61_v5, 0.0  ;;  %v169_v9 = vrot.slane %v168_v57, 4  ;;  %p444_p10 = scmp.ne.s32.totalorder %s350_s1, %s443_s30  ;;  %p448_p11 = scmp.lt.s32.totalorder %s350_s1, %s350_s1 }
  0x26   :  { %v70_v21 = vmax.f32 %v68_v13, %v69_v17  ;;  %v76_v22 = vrot.slane %v75_v18, 2  ;;  %v84_v23 = vmax.f32 %v82_v15, %v83_v19  ;;  %v90_v24 = vrot.slane %v89_v20, 2  ;;  %p449_p12 = scmp.lt.s32.totalorder %s447_s4, %s443_s30 }
  0x27   :  { %v162_v12 = vrot.slane %v161_v61, 4  ;;  %v156_v17 = vadd.f32 %v155_v60, %v154_v50  ;;  %v170_v19 = vadd.f32 %v169_v9, %v168_v57  ;;  %vm277_vm4 = vcmask 1040384  }
  0x28   :  { %v71_v25 = vrot.slane %v70_v21, 1  ;;  %v77_v26 = vmax.f32 %v75_v18, %v76_v22  ;;  %v85_v27 = vrot.slane %v84_v23, 1  ;;  %v91_v28 = vmax.f32 %v89_v20, %v90_v24  ;;  %p450_p13 = por %p449_p12, %p448_p11 }
  0x29   :  { %v244_v37 = vld [vmem:[#allocation3] sm:$0x3]  ;;  %v245_v38 = vld [vmem:[#allocation3 + $0x2] sm:$0x3]  ;;  %v163_v22 = vadd.f32 %v162_v12, %v161_v61 }
  0x2a   :  { %v547_v29 = vmax.f32 %v70_v21, %v71_v25  ;;  %v78_v30 = vrot.slane %v77_v26, 1  ;;  %v549_v31 = vmax.f32 %v84_v23, %v85_v27  ;;  %v92_v32 = vrot.slane %v91_v28, 1  ;;  %p451_p0 = pnand %p450_p13, %p444_p10 }
  0x2b   :  { %v246_v43 = vadd.f32 %v373_v41, %v244_v37  ;;  %v247_v46 = vadd.f32 %v374_v42, %v245_v38  ;;  %v157_v27 = vrot.slane %v156_v17, 2  ;;  %v164_v38 = vrot.slane %v163_v22, 2 }
  0x2c   :  { %v555_v35 = vmax.f32 %v77_v26, %v78_v30  ;;  %v557_v36 = vmax.f32 %v91_v28, %v92_v32  ;;  %v171_v32 = vrot.slane %v170_v19, 2 }
  0x2d   :  { %248 = vst.msk [vmem:[#allocation3] sm:$0x3] %vm528_vm0, %v246_v43  ;;  %249 = vst.msk [vmem:[#allocation3 + $0x2] sm:$0x3] %vm528_vm0, %v247_v46  ;;  %v158_v41 = vadd.f32 %v157_v27, %v156_v17  ;;  %v165_v43 = vadd.f32 %v164_v38, %v163_v22  ;;  %v234_v22 = vld [vmem:[#allocation2] sm:$0x3] }
  0x2e   :  { %v98_v39 = vcombine.low %v547_v29, %v555_v35  ;;  %v99_v40 = vcombine.low %v549_v31, %v557_v36  ;;  %v172_v42 = vadd.f32 %v171_v32, %v170_v19 }
  0x30   :  { %v102_v44 = vsub.f32 %v55_v3, %v98_v39  ;;  %v103_v45 = vsub.f32 %v56_v4, %v99_v40  ;;  %v175_v3 = vsel %vm65_vm1, %v540_v6, 0.0  ;;  %v173_v46 = vrot.slane %v172_v42, 1 }
  0x31   :  { %v176_v14 = vrot.slane %v175_v3, 4 }
  0x32   :  { %v104_v47 = vmul.f32 1.442695, %v102_v44  ;;  %v106_v48 = vmul.f32 1.442695, %v103_v45  ;;  %v159_v45 = vrot.slane %v158_v41, 1  ;;  %v174_v50 = vadd.f32 %v173_v46, %v172_v42 }
  0x33   :  { %v177_v24 = vadd.f32 %v176_v14, %v175_v3 }
  0x34   :  { %391 = vpow2.f32 %v104_v47  ;;  %v166_v47 = vrot.slane %v165_v43, 1  ;;  %v184_v61 = vmul.f32 0.25, %v174_v50 }
  0x35   :  { %393 = vpow2.f32 %v106_v48  ;;  %v178_v40 = vrot.slane %v177_v24, 2 }
  0x37   :  { %v179_v44 = vadd.f32 %v178_v40, %v177_v24 }
  0x39   :  { %v180_v48 = vrot.slane %v179_v44, 1 }
  0x41   :  { %v392_v49 = vpop.eup %391 }
  0x42   :  { %v394_v51 = vpop.eup %393  ;;  %v110_v52 = vcombine.high %v392_v49, %v392_v49  ;;  %v114_v53 = vsel %vm65_vm1, %v392_v49, 0.0  ;;  %v160_v49 = vadd.f32 %v159_v45, %v158_v41 }
  0x43   :  { %v111_v54 = vcombine.high %v394_v51, %v394_v51  ;;  %v115_v55 = vrot.slane %v114_v53, 4  ;;  %v128_v56 = vsel %vm65_vm1, %v394_v51, 0.0  ;;  %v167_v51 = vadd.f32 %v166_v47, %v165_v43 }
  0x44   :  { %v121_v58 = vsel %vm65_vm1, %v110_v52, 0.0  ;;  %v129_v59 = vrot.slane %v128_v56, 4  ;;  %v498_v52 = vmov 1966171168  }
  0x45   :  { %v116_v62 = vadd.f32 %v115_v55, %v114_v53  ;;  %v122_v63 = vrot.slane %v121_v58, 4  ;;  %v135_v2 = vsel %vm65_vm1, %v111_v54, 0.0  ;;  %v196_v53 = vunpack.c.l.s4 %v498_v52 }
  0x46   :  { %v130_v7 = vadd.f32 %v129_v59, %v128_v56  ;;  %v136_v8 = vrot.slane %v135_v2, 4  ;;  %v181_v55 = vadd.f32 %v180_v48, %v179_v44 }
  0x47   :  { %v117_v10 = vrot.slane %v116_v62, 2  ;;  %v123_v11 = vadd.f32 %v122_v63, %v121_v58  ;;  %v182_v58 = vmul.f32 0.25, %v160_v49 }
  0x48   :  { %v131_v4 = vrot.slane %v130_v7, 2  ;;  %v137_v13 = vadd.f32 %v136_v8, %v135_v2  ;;  %v197_v8 = vunpack.c.0.s8 %v196_v53 }
  0x49   :  { %v118_v15 = vadd.f32 %v117_v10, %v116_v62  ;;  %v124_v16 = vrot.slane %v123_v11, 2  ;;  %v199_v62 = vshrl.u32 %v47_v0, 7 }
  0x4a   :  { %v132_v5 = vadd.f32 %v131_v4, %v130_v7  ;;  %v138_v18 = vrot.slane %v137_v13, 2  ;;  %v183_v7 = vmul.f32 0.25, %v167_v51 }
  0x4b   :  { %v119_v20 = vrot.slane %v118_v15, 1  ;;  %v125_v21 = vadd.f32 %v124_v16, %v123_v11  ;;  %v185_v11 = vmul.f32 0.25, %v181_v55  ;;  %v200_v16 = vsub.s32 %v197_v8, %v199_v62 }
  0x4c   :  { %v133_v23 = vrot.slane %v132_v5, 1  ;;  %v139_v6 = vadd.f32 %v138_v18, %v137_v13 }
  0x4d   :  { %v120_v25 = vadd.f32 %v119_v20, %v118_v15  ;;  %v126_v26 = vrot.slane %v125_v21, 1 }
  0x4e   :  { %v134_v28 = vadd.f32 %v133_v23, %v132_v5  ;;  %v140_v30 = vrot.slane %v139_v6, 1 }
  0x4f   :  { %v127_v37 = vadd.f32 %v126_v26, %v125_v21  ;;  %395 = vlog2.f32 %v120_v25  ;;  %v294_v25 = vld [vmem:[#allocation3] sm:$0x3]  ;;  %v263_v26 = vsub.s32 1, %v199_v62 }
  0x50   :  { %v141_v39 = vadd.f32 %v140_v30, %v139_v6  ;;  %397 = vlog2.f32 %v134_v28  ;;  %v295_v30 = vld [vmem:[#allocation3 + $0x2] sm:$0x3] }
  0x51   :  { %399 = vlog2.f32 %v127_v37  ;;  %v305_v28 = vrot.slane %v294_v25, %v263_v26  ;;  %v313_v45 = vrot.slane %v295_v30, %v263_v26 }
  0x52   :  { %401 = vlog2.f32 %v141_v39 }
  0x53   :  { %v323_v52 = vsel %vm277_vm4, %v313_v45, 0.0 }
  0x5c   :  { %v396_v54 = vpop.eup %395 }
  0x5d   :  { %v398_v56 = vpop.eup %397  ;;  %v143_v57 = vmul.f32 0.6931472, %v396_v54 }
  0x5e   :  { %v400_v59 = vpop.eup %399  ;;  %v147_v60 = vmul.f32 0.6931472, %v398_v56 }
  0x5f   :  { %v402_v63 = vpop.eup %401  ;;  %v145_v2 = vmul.f32 0.6931472, %v400_v59  ;;  %v150_v3 = vadd.f32 %v143_v57, %v547_v29 }
  0x60   :  { %v149_v9 = vmul.f32 0.6931472, %v402_v63  ;;  %v152_v10 = vadd.f32 %v147_v60, %v549_v31  ;;  %v235_v31 = vld [vmem:[#allocation2 + $0x2] sm:$0x3] }
  0x61   :  { %v151_v12 = vadd.f32 %v145_v2, %v555_v35  ;;  %v186_v4 = vsub.f32 %v150_v3, %v182_v58 }
  0x62   :  { %v153_v13 = vadd.f32 %v149_v9, %v557_v36  ;;  %v188_v14 = vsub.f32 %v152_v10, %v184_v61  ;;  %v259_v36 = vsub.s32 0, %v199_v62  ;;  %v335_v10 = vand.u32 127, %v47_v0 }
  0x63   :  { %v187_v15 = vsub.f32 %v151_v12, %v183_v7 }
  0x64   :  { %v189_v17 = vsub.f32 %v153_v13, %v185_v11  ;;  %v301_v27 = vrot.slane %v294_v25, %v259_v36  ;;  %v309_v32 = vrot.slane %v295_v30, %v259_v36  ;;  %vm336_vm5 = vcmp.eq.s32.totalorder %v335_v10, 0 }
  0x65   :  { %v194_v5 = vcombine.low %v186_v4, %v187_v15 }
  0x66   :  { %v209_v18 = vcombine.low %v188_v14, %v189_v17  ;;  %v321_v46 = vsel %vm277_vm4, %v309_v32, 0.0 }
  0x67   :  { %v201_v19 = vrot.slane %v194_v5, %v200_v16 }
  0x68   :  { %v216_v20 = vrot.slane %v209_v18, %v200_v16 }
  0x69   :  { %v208_v29 = vrot.slane %v201_v19, %v200_v16 }
  0x6a   :  { %v223_v21 = vrot.slane %v216_v20, %v200_v16 }
  0x6b   :  { %v226_v23 = vmul.f32 %v208_v29, %v551_v33  ;;  %v318_v33 = vsel %vm277_vm4, %v301_v27, 0.0 }
  0x6c   :  { %v227_v6 = vmul.f32 %v223_v21, %v553_v34  ;;  %v319_v34 = vsel %vm277_vm4, %v305_v28, 0.0 }
  0x6d   :  { %v236_v35 = vadd.f32 %v234_v22, %v226_v23  ;;  %v320_v43 = vadd.f32 %v319_v34, %v318_v33 }
  0x6e   :  { %v237_v24 = vadd.f32 %v235_v31, %v227_v6 }
  0x6f   :  { %242 = vst.msk [vmem:[#allocation2] sm:$0x3] %vm528_vm0, %v236_v35  ;;  %v322_v51 = vadd.f32 %v321_v46, %v320_v43 }
  0x70   :  { %243 = vst.msk [vmem:[#allocation2 + $0x2] sm:$0x3] %vm528_vm0, %v237_v24 }
  0x71   :  { %v324_v54 = vadd.f32 %v323_v52, %v322_v51 }
  0x76   :  { %v253_v37 = vld [vmem:[#allocation2] sm:$0x3] }
  0x77   :  { %v254_v38 = vld [vmem:[#allocation2 + $0x2] sm:$0x3]  ;;  %v260_v39 = vrot.slane %v253_v37, %v259_v36  ;;  %v264_v40 = vrot.slane %v253_v37, %v263_v26 }
  0x78   :  { %v268_v41 = vrot.slane %v254_v38, %v259_v36  ;;  %v272_v42 = vrot.slane %v254_v38, %v263_v26 }
  0x79   :  { %v278_v44 = vsel %vm277_vm4, %v260_v39, 0.0  ;;  %v279_v1 = vsel %vm277_vm4, %v264_v40, 0.0 }
  0x7a   :  { %v280_v47 = vadd.f32 %v279_v1, %v278_v44  ;;  %v281_v48 = vsel %vm277_vm4, %v268_v41, 0.0  ;;  %v283_v49 = vsel %vm277_vm4, %v272_v42, 0.0 }
  0x7c   :  { %v282_v50 = vadd.f32 %v281_v48, %v280_v47 }
  0x7e   :  { %v284_v53 = vadd.f32 %v283_v49, %v282_v50 }
  0x80   :  { %285 = vadd.xlane.f32.xlu0 %v284_v53 }
  0x84   :  { %325 = vadd.xlane.f32.xlu0 %v324_v54 }
 0x109   :  { %v286_v55 = vpop.xlane.xlu0 %285 }
 0x10a   :  { %v287_v56 = vrot.slane %v286_v55, 4 }
 0x10c   :  { %v288_v57 = vadd.f32 %v287_v56, %v286_v55 }
 0x10d   :  { %v326_v58 = vpop.xlane.xlu0 %325 }
 0x10e   :  { %v289_v59 = vrot.slane %v288_v57, 2  ;;  %v327_v60 = vrot.slane %v326_v58, 4 }
 0x110   :  { %v328_v61 = vadd.f32 %v327_v60, %v326_v58  ;;  %v290_v62 = vadd.f32 %v289_v59, %v288_v57 }
 0x112   :  { %v329_v63 = vrot.slane %v328_v61, 2  ;;  %v291_v2 = vrot.slane %v290_v62, 1 }
 0x114   :  { %v330_v3 = vadd.f32 %v329_v63, %v328_v61  ;;  %v292_v7 = vadd.f32 %v291_v2, %v290_v62 }
 0x116   :  { %375 = vpush %v292_v7  ;;  %v331_v8 = vrot.slane %v330_v3, 1 }
 0x118   :  { %v332_v9 = vadd.f32 %v331_v8, %v330_v3 }
 0x11a   :  { %377 = vpush %v332_v9 }
 0x147   :  { %s376_s26 = spop %375 }
 0x148   :  { %v337_v11 = vstv %s376_s26 }
 0x149   :  { %v338_v12 = vsel %vm336_vm5, %v337_v11, 0.0 }
 0x14a   :  { %339 = vst [vmem:[#allocation9] sm:$0x1] %v338_v12 }
 0x14b   :  { %s378_s29 = spop %377 }
 0x14c   :  { %v340_v4 = vstv %s378_s29 }
 0x14d   :  { %454 = shalt.err (!%p451_p0)
}
 0x14e   :  { %352 = dma.vmem_to_hbm [thread:$0]  %s350_s1, 16, %s608_s2, [#allocation6]   ;;  %v341_v0 = vsel %vm336_vm5, %v340_v4, 0.0 }
 0x14f   :  { %342 = vst [vmem:[#allocation10] sm:$0x1] %v341_v0  ;;  %s463_s7 = scalar_lea.vmem %s360_s28, 16  ;;  %s467_s8 = scalar_lea.vmem %s360_s28, 32 }
 0x150   :  { %p464_p1 = scmp.ne.s32.totalorder %s360_s28, %s463_s7  ;;  %p468_p2 = scmp.lt.s32.totalorder %s360_s28, %s360_s28 }
 0x151   :  { %p469_p3 = scmp.lt.s32.totalorder %s467_s8, %s463_s7 }
 0x153   :  { %p470_p4 = por %p469_p3, %p468_p2 }
 0x155   :  { %p471_p5 = pnand %p470_p4, %p464_p1 }
 0x157   :  { %474 = shalt.err (!%p471_p5)
}
 0x158   :  { %362 = dma.vmem_to_hbm [thread:$0]  %s360_s28, 16, %s609_s3, [#allocation11]  }
 0x159   :  { %487 = dma.done.wait [#allocation6], 16  }
 0x15a   :  { %488 = vsyncadd [#allocation6], 4294967280 }
 0x15b   :  { %489 = dma.done.wait [#allocation11], 16  }
 0x15c   :  { %490 = vsyncadd [#allocation11], 4294967280 }
 0x15d   :  { %369 = vsyncpa [#allocation5], 1 }
 0x15e   :  { %370 = vsyncpa [#allocation8], 1 }
 0x15f   :  { %371 = vsyncpa [#allocation6], 1 }
 0x160   :  { %372 = vsyncpa [#allocation11], 1 }

</bundles_post_ra>
